<compile_context>
chip_gen: v5e
topology: v5e:2x2
jax: 0.10.0
libtpu: 0.0.40
codegen_flags: <defaults>
</compile_context>

<pallas_src>
import functools

import jax
import jax.numpy as jnp
from jax.experimental import pallas as pl
from jax.experimental.pallas import tpu as pltpu

# MLP dims: 784 -> 128 -> 64 -> 12 -> 3 -> 12 -> 64 -> 128 -> 784
DIMS = [28 * 28, 128, 64, 12, 3, 12, 64, 128, 28 * 28]


def _round_up(x, m):
    return ((x + m - 1) // m) * m


def _device_kind():
    try:
        return jax.devices()[0].device_kind.lower()
    except Exception:
        return ""


def autoencoder_kernel(x_ref,
                       w1, b1, w2, b2, w3, b3,        # encoder (layers 1-3)
                       w45, b45,                      # fused 12->3->12 bottleneck
                       w6, b6, w7, b7, w8, b8,        # decoder (layers 6-8)
                       o_ref, *, tanh_dtype):
    """Whole forward pass (7 matmuls after bottleneck fusion) on one batch tile."""
    x = x_ref[...]

    def linear(h, w_ref, b_ref):
        w = w_ref[...]
        # Cast only the MXU operands to the weight dtype (no-op if h is already
        # bf16); accumulate in f32; bias add / ReLU stay in f32.
        return jnp.dot(h.astype(w.dtype), w,
                       preferred_element_type=jnp.float32) + b_ref[...]

    h = jnp.maximum(linear(x, w1, b1), 0.0)      # 784 -> 128, ReLU
    h = jnp.maximum(linear(h, w2, b2), 0.0)      # 128 -> 64,  ReLU
    h = jnp.maximum(linear(h, w3, b3), 0.0)      # 64  -> 12,  ReLU
    h = jnp.maximum(linear(h, w45, b45), 0.0)    # 12 -> (3) -> 12, fused, ReLU
    h = jnp.maximum(linear(h, w6, b6), 0.0)      # 12  -> 64,  ReLU
    h = jnp.maximum(linear(h, w7, b7), 0.0)      # 64  -> 128, ReLU
    z = linear(h, w8, b8)                        # 128 -> 784, pre-activation (f32)
    # Tanh epilogue: in bf16 on bf16-EUP chips (halves EUP pushes of the
    # 784-wide epilogue), f32 on v5e.  Store cast is a no-op when dtypes match.
    o_ref[...] = jnp.tanh(z.astype(tanh_dtype)).astype(o_ref.dtype)


@functools.partial(
    jax.jit,
    static_argnames=("block_n", "use_bf16", "out_dtype", "tanh_dtype",
                     "num_tc", "vmem_limit_bytes"))
def _autoencoder_forward(x, params, *, block_n, use_bf16, out_dtype,
                         tanh_dtype, num_tc, vmem_limit_bytes):
    n, d_in = x.shape
    assert d_in == DIMS[0]

    (w1, b1, w2, b2, w3, b3, w4, b4,
     w5, b5, w6, b6, w7, b7, w8, b8) = params

    # Fuse the activation-free bottleneck pair (Linear 12->3, Linear 3->12)
    # into one 12x12 layer (valid: the module has no nonlinearity between
    # them).  Done in f32 for accuracy; removes the two worst-shaped MXU ops.
    w45 = w4 @ w5                       # (12, 12)
    b45 = b4 @ w5 + b5                  # (1, 12)

    weights = [w1, w2, w3, w45, w6, w7, w8]
    biases = [b1, b2, b3, b45, b6, b7, b8]
    if use_bf16:
        # Weights in bf16 (MXU-native); biases stay f32 so the
        # post-accumulation add is done in f32.
        weights = [w.astype(jnp.bfloat16) for w in weights]
    kernel_params = []
    for w, b in zip(weights, biases):
        kernel_params += [w, b]

    # Batch tile: multiple of 8 sublanes, capped at block_n, and (on multi-TC
    # chips) small enough that the "parallel" batch grid has >= 1 step per
    # TensorCore so both cores get work.
    bn = min(block_n, _round_up(n, 8))
    if num_tc > 1 and n > 8:
        bn = min(bn, _round_up(pl.cdiv(n, num_tc), 8))
    bn = max(8, (bn // 8) * 8)
    grid = (pl.cdiv(n, bn),)           # ragged last tile handled by Pallas
                                       # (clamped read DMA, masked writeback)

    # Each weight/bias is small, so pass it whole (block == full array shape)
    # mapped to the same block every grid step -> fetched once, kept resident.
    param_specs = [pl.BlockSpec(p.shape, lambda i: (0, 0)) for p in kernel_params]

    kernel = functools.partial(autoencoder_kernel, tanh_dtype=tanh_dtype)
    out = pl.pallas_call(
        kernel,
        out_shape=jax.ShapeDtypeStruct((n, DIMS[-1]), out_dtype),
        grid_spec=pltpu.PrefetchScalarGridSpec(
            num_scalar_prefetch=0,
            grid=grid,
            in_specs=[pl.BlockSpec((bn, DIMS[0]), lambda i: (i, 0))]
            + param_specs,
            out_specs=pl.BlockSpec((bn, DIMS[-1]), lambda i: (i, 0)),
        ),
        compiler_params=pltpu.CompilerParams(
            dimension_semantics=("parallel",),        # megacore-shard the batch grid
            vmem_limit_bytes=vmem_limit_bytes,        # generation-aware, see wrapper
        ),
    )(x, *kernel_params)
    return out


def autoencoder_forward(x, params, *, block_n=1024, use_bf16=True, out_dtype=None):
    """x: (N, 784) f32 or bf16. params: flat list [w1,b1,...,w8,b8] (w as (in,out)).

    Fast path (default): bf16 weights + bf16 output; pass x already in bf16 to
    also halve input HBM traffic (the wrapper deliberately never casts x).
    Exact path: use_bf16=False -> f32 weights, f32 output.
    """
    kind = _device_kind()
    is_v5e = ("v5e" in kind) or ("v5 lite" in kind) or ("v5litepod" in kind)
    is_v7 = ("v7" in kind) or ("7x" in kind)
    num_tc = 2 if is_v7 else 1
    if ("v5" in kind) or ("v6" in kind):
        vmem_limit = 64 * 1024 * 1024   # 128 MiB physical: plenty of headroom
    else:
        vmem_limit = 40 * 1024 * 1024   # safe under v7x's 64 MiB per-TC VMEM

    if out_dtype is None:
        out_dtype = jnp.bfloat16 if use_bf16 else jnp.float32
    tanh_dtype = (jnp.bfloat16
                  if (out_dtype == jnp.bfloat16 and not is_v5e)
                  else jnp.float32)

    return _autoencoder_forward(
        x, tuple(params),
        block_n=int(block_n), use_bf16=bool(use_bf16),
        out_dtype=out_dtype, tanh_dtype=tanh_dtype,
        num_tc=num_tc, vmem_limit_bytes=vmem_limit)


def init_params(key):
    """Deterministic init of the 8 Linear layers. Weights stored as (in, out)."""
    params = []
    for i in range(len(DIMS) - 1):
        fan_in, fan_out = DIMS[i], DIMS[i + 1]
        key, kw, kb = jax.random.split(key, 3)
        bound = 1.0 / jnp.sqrt(fan_in)
        w = jax.random.uniform(kw, (fan_in, fan_out), jnp.float32, -bound, bound)
        b = jax.random.uniform(kb, (1, fan_out), jnp.float32, -bound, bound)
        params.extend([w, b])
    return params


def reference_forward(x, params):
    """Pure-JAX f32 reference with the original (unfused) layer structure."""
    h = x
    acts = ["relu", "relu", "relu", "none",   # encoder
            "relu", "relu", "relu", "tanh"]   # decoder
    for li, act in enumerate(acts):
        w, b = params[2 * li], params[2 * li + 1]
        h = h @ w + b
        if act == "relu":
            h = jnp.maximum(h, 0.0)
        elif act == "tanh":
            h = jnp.tanh(h)
    return h


if __name__ == "__main__":
    key = jax.random.PRNGKey(0)
    key, kx = jax.random.split(key)

    batch = 12  # small, NOT a multiple of 8 -> exercises the ragged last tile
    x = jax.random.normal(kx, (batch, 28 * 28), jnp.float32)
    params = init_params(key)
    ref = reference_forward(x, params)

    # Exact-math path: f32 weights / f32 x / f32 out, tiny tile -> multi-step
    # grid with a masked partial last tile (no pad / slice copies anywhere).
    out_f32 = autoencoder_forward(x, params, block_n=8, use_bf16=False)
    out_f32 = jax.block_until_ready(out_f32)
    assert out_f32.shape == (batch, 28 * 28)
    assert out_f32.dtype == jnp.float32
    assert jnp.allclose(out_f32, ref, atol=1e-4, rtol=1e-4)

    # Fast path: bf16 weights, bf16 x handed in by the producer (cast happens
    # outside the wrapper, once), bf16 output, default large tile.
    x_bf16 = x.astype(jnp.bfloat16)
    out_bf16 = autoencoder_forward(x_bf16, params)   # block_n=1024, use_bf16=True
    out_bf16 = jax.block_until_ready(out_bf16)
    assert out_bf16.shape == (batch, 28 * 28)
    assert out_bf16.dtype == jnp.bfloat16
    assert jnp.allclose(out_bf16.astype(jnp.float32), ref, atol=5e-2, rtol=5e-2)

    print("KERNEL_OK")
</pallas_src>

<mosaic_0001>
module attributes {stable_mosaic.version = 11 : i64} {
  func.func @autoencoder_kernel(%arg0: i32, %arg1: memref<8x784xf32, #tpu.memory_space<vmem>>, %arg2: memref<784x128xf32, #tpu.memory_space<vmem>>, %arg3: memref<1x128xf32, #tpu.memory_space<vmem>>, %arg4: memref<128x64xf32, #tpu.memory_space<vmem>>, %arg5: memref<1x64xf32, #tpu.memory_space<vmem>>, %arg6: memref<64x12xf32, #tpu.memory_space<vmem>>, %arg7: memref<1x12xf32, #tpu.memory_space<vmem>>, %arg8: memref<12x12xf32, #tpu.memory_space<vmem>>, %arg9: memref<1x12xf32, #tpu.memory_space<vmem>>, %arg10: memref<12x64xf32, #tpu.memory_space<vmem>>, %arg11: memref<1x64xf32, #tpu.memory_space<vmem>>, %arg12: memref<64x128xf32, #tpu.memory_space<vmem>>, %arg13: memref<1x128xf32, #tpu.memory_space<vmem>>, %arg14: memref<128x784xf32, #tpu.memory_space<vmem>>, %arg15: memref<1x784xf32, #tpu.memory_space<vmem>>, %arg16: memref<8x784xf32, #tpu.memory_space<vmem>>) attributes {dimension_semantics = [#tpu.dimension_semantics<parallel>], iteration_bounds = array<i64: 2>, scalar_prefetch = 0 : i64, scratch_operands = 0 : i64, tpu.core_type = #tpu.core_type<tc>, window_params = [{transform_indices = @transform_0, window_bounds = array<i64: 8, 784>}, {pipeline_mode = #tpu.pipeline_mode<synchronous>, transform_indices = @transform_1, window_bounds = array<i64: 784, 128>}, {pipeline_mode = #tpu.pipeline_mode<synchronous>, transform_indices = @transform_2, window_bounds = array<i64: 1, 128>}, {pipeline_mode = #tpu.pipeline_mode<synchronous>, transform_indices = @transform_3, window_bounds = array<i64: 128, 64>}, {pipeline_mode = #tpu.pipeline_mode<synchronous>, transform_indices = @transform_4, window_bounds = array<i64: 1, 64>}, {pipeline_mode = #tpu.pipeline_mode<synchronous>, transform_indices = @transform_5, window_bounds = array<i64: 64, 12>}, {pipeline_mode = #tpu.pipeline_mode<synchronous>, transform_indices = @transform_6, window_bounds = array<i64: 1, 12>}, {pipeline_mode = #tpu.pipeline_mode<synchronous>, transform_indices = @transform_7, window_bounds = array<i64: 12, 12>}, {pipeline_mode = #tpu.pipeline_mode<synchronous>, transform_indices = @transform_8, window_bounds = array<i64: 1, 12>}, {pipeline_mode = #tpu.pipeline_mode<synchronous>, transform_indices = @transform_9, window_bounds = array<i64: 12, 64>}, {pipeline_mode = #tpu.pipeline_mode<synchronous>, transform_indices = @transform_10, window_bounds = array<i64: 1, 64>}, {pipeline_mode = #tpu.pipeline_mode<synchronous>, transform_indices = @transform_11, window_bounds = array<i64: 64, 128>}, {pipeline_mode = #tpu.pipeline_mode<synchronous>, transform_indices = @transform_12, window_bounds = array<i64: 1, 128>}, {pipeline_mode = #tpu.pipeline_mode<synchronous>, transform_indices = @transform_13, window_bounds = array<i64: 128, 784>}, {pipeline_mode = #tpu.pipeline_mode<synchronous>, transform_indices = @transform_14, window_bounds = array<i64: 1, 784>}, {transform_indices = @transform_15, window_bounds = array<i64: 8, 784>}]} {
    %c0 = arith.constant 0 : index
    %c0_0 = arith.constant 0 : index
    %0 = vector.load %arg1[%c0, %c0_0] : memref<8x784xf32, #tpu.memory_space<vmem>>, vector<8x784xf32>
    %c0_1 = arith.constant 0 : index
    %c0_2 = arith.constant 0 : index
    %1 = vector.load %arg2[%c0_1, %c0_2] : memref<784x128xf32, #tpu.memory_space<vmem>>, vector<784x128xf32>
    %cst = arith.constant dense<0.000000e+00> : vector<8x128xf32>
    %2 = tpu.matmul %0, %1, %cst {dimension_numbers = #tpu.dot_dimension_numbers<[1], [0], [0], [1], [0, 0, 1, 1], [], []>} : vector<8x784xf32>, vector<784x128xf32>, vector<8x128xf32> -> vector<8x128xf32>
    %c0_3 = arith.constant 0 : index
    %c0_4 = arith.constant 0 : index
    %3 = vector.load %arg3[%c0_3, %c0_4] : memref<1x128xf32, #tpu.memory_space<vmem>>, vector<1x128xf32>
    %4 = vector.broadcast %3 : vector<1x128xf32> to vector<8x128xf32>
    %5 = arith.addf %2, %4 : vector<8x128xf32>
    %cst_5 = arith.constant 0.000000e+00 : f32
    %6 = vector.broadcast %cst_5 : f32 to vector<8x128xf32>
    %7 = arith.maximumf %5, %6 : vector<8x128xf32>
    %c0_6 = arith.constant 0 : index
    %c0_7 = arith.constant 0 : index
    %8 = vector.load %arg4[%c0_6, %c0_7] : memref<128x64xf32, #tpu.memory_space<vmem>>, vector<128x64xf32>
    %cst_8 = arith.constant dense<0.000000e+00> : vector<8x64xf32>
    %9 = tpu.matmul %7, %8, %cst_8 {dimension_numbers = #tpu.dot_dimension_numbers<[1], [0], [0], [1], [0, 0, 1, 1], [], []>} : vector<8x128xf32>, vector<128x64xf32>, vector<8x64xf32> -> vector<8x64xf32>
    %c0_9 = arith.constant 0 : index
    %c0_10 = arith.constant 0 : index
    %10 = vector.load %arg5[%c0_9, %c0_10] : memref<1x64xf32, #tpu.memory_space<vmem>>, vector<1x64xf32>
    %11 = vector.broadcast %10 : vector<1x64xf32> to vector<8x64xf32>
    %12 = arith.addf %9, %11 : vector<8x64xf32>
    %cst_11 = arith.constant 0.000000e+00 : f32
    %13 = vector.broadcast %cst_11 : f32 to vector<8x64xf32>
    %14 = arith.maximumf %12, %13 : vector<8x64xf32>
    %c0_12 = arith.constant 0 : index
    %c0_13 = arith.constant 0 : index
    %15 = vector.load %arg6[%c0_12, %c0_13] : memref<64x12xf32, #tpu.memory_space<vmem>>, vector<64x12xf32>
    %cst_14 = arith.constant dense<0.000000e+00> : vector<8x12xf32>
    %16 = tpu.matmul %14, %15, %cst_14 {dimension_numbers = #tpu.dot_dimension_numbers<[1], [0], [0], [1], [0, 0, 1, 1], [], []>} : vector<8x64xf32>, vector<64x12xf32>, vector<8x12xf32> -> vector<8x12xf32>
    %c0_15 = arith.constant 0 : index
    %c0_16 = arith.constant 0 : index
    %17 = vector.load %arg7[%c0_15, %c0_16] : memref<1x12xf32, #tpu.memory_space<vmem>>, vector<1x12xf32>
    %18 = vector.broadcast %17 : vector<1x12xf32> to vector<8x12xf32>
    %19 = arith.addf %16, %18 : vector<8x12xf32>
    %cst_17 = arith.constant 0.000000e+00 : f32
    %20 = vector.broadcast %cst_17 : f32 to vector<8x12xf32>
    %21 = arith.maximumf %19, %20 : vector<8x12xf32>
    %c0_18 = arith.constant 0 : index
    %c0_19 = arith.constant 0 : index
    %22 = vector.load %arg8[%c0_18, %c0_19] : memref<12x12xf32, #tpu.memory_space<vmem>>, vector<12x12xf32>
    %cst_20 = arith.constant dense<0.000000e+00> : vector<8x12xf32>
    %23 = tpu.matmul %21, %22, %cst_20 {dimension_numbers = #tpu.dot_dimension_numbers<[1], [0], [0], [1], [0, 0, 1, 1], [], []>} : vector<8x12xf32>, vector<12x12xf32>, vector<8x12xf32> -> vector<8x12xf32>
    %c0_21 = arith.constant 0 : index
    %c0_22 = arith.constant 0 : index
    %24 = vector.load %arg9[%c0_21, %c0_22] : memref<1x12xf32, #tpu.memory_space<vmem>>, vector<1x12xf32>
    %25 = vector.broadcast %24 : vector<1x12xf32> to vector<8x12xf32>
    %26 = arith.addf %23, %25 : vector<8x12xf32>
    %cst_23 = arith.constant 0.000000e+00 : f32
    %27 = vector.broadcast %cst_23 : f32 to vector<8x12xf32>
    %28 = arith.maximumf %26, %27 : vector<8x12xf32>
    %c0_24 = arith.constant 0 : index
    %c0_25 = arith.constant 0 : index
    %29 = vector.load %arg10[%c0_24, %c0_25] : memref<12x64xf32, #tpu.memory_space<vmem>>, vector<12x64xf32>
    %cst_26 = arith.constant dense<0.000000e+00> : vector<8x64xf32>
    %30 = tpu.matmul %28, %29, %cst_26 {dimension_numbers = #tpu.dot_dimension_numbers<[1], [0], [0], [1], [0, 0, 1, 1], [], []>} : vector<8x12xf32>, vector<12x64xf32>, vector<8x64xf32> -> vector<8x64xf32>
    %c0_27 = arith.constant 0 : index
    %c0_28 = arith.constant 0 : index
    %31 = vector.load %arg11[%c0_27, %c0_28] : memref<1x64xf32, #tpu.memory_space<vmem>>, vector<1x64xf32>
    %32 = vector.broadcast %31 : vector<1x64xf32> to vector<8x64xf32>
    %33 = arith.addf %30, %32 : vector<8x64xf32>
    %cst_29 = arith.constant 0.000000e+00 : f32
    %34 = vector.broadcast %cst_29 : f32 to vector<8x64xf32>
    %35 = arith.maximumf %33, %34 : vector<8x64xf32>
    %c0_30 = arith.constant 0 : index
    %c0_31 = arith.constant 0 : index
    %36 = vector.load %arg12[%c0_30, %c0_31] : memref<64x128xf32, #tpu.memory_space<vmem>>, vector<64x128xf32>
    %cst_32 = arith.constant dense<0.000000e+00> : vector<8x128xf32>
    %37 = tpu.matmul %35, %36, %cst_32 {dimension_numbers = #tpu.dot_dimension_numbers<[1], [0], [0], [1], [0, 0, 1, 1], [], []>} : vector<8x64xf32>, vector<64x128xf32>, vector<8x128xf32> -> vector<8x128xf32>
    %c0_33 = arith.constant 0 : index
    %c0_34 = arith.constant 0 : index
    %38 = vector.load %arg13[%c0_33, %c0_34] : memref<1x128xf32, #tpu.memory_space<vmem>>, vector<1x128xf32>
    %39 = vector.broadcast %38 : vector<1x128xf32> to vector<8x128xf32>
    %40 = arith.addf %37, %39 : vector<8x128xf32>
    %cst_35 = arith.constant 0.000000e+00 : f32
    %41 = vector.broadcast %cst_35 : f32 to vector<8x128xf32>
    %42 = arith.maximumf %40, %41 : vector<8x128xf32>
    %c0_36 = arith.constant 0 : index
    %c0_37 = arith.constant 0 : index
    %43 = vector.load %arg14[%c0_36, %c0_37] : memref<128x784xf32, #tpu.memory_space<vmem>>, vector<128x784xf32>
    %cst_38 = arith.constant dense<0.000000e+00> : vector<8x784xf32>
    %44 = tpu.matmul %42, %43, %cst_38 {dimension_numbers = #tpu.dot_dimension_numbers<[1], [0], [0], [1], [0, 0, 1, 1], [], []>} : vector<8x128xf32>, vector<128x784xf32>, vector<8x784xf32> -> vector<8x784xf32>
    %c0_39 = arith.constant 0 : index
    %c0_40 = arith.constant 0 : index
    %45 = vector.load %arg15[%c0_39, %c0_40] : memref<1x784xf32, #tpu.memory_space<vmem>>, vector<1x784xf32>
    %46 = vector.broadcast %45 : vector<1x784xf32> to vector<8x784xf32>
    %47 = arith.addf %44, %46 : vector<8x784xf32>
    %48 = math.tanh %47 : vector<8x784xf32>
    %c0_41 = arith.constant 0 : index
    %c0_42 = arith.constant 0 : index
    %49 = vector.load %arg16[%c0_41, %c0_42] : memref<8x784xf32, #tpu.memory_space<vmem>>, vector<8x784xf32>
    tpu.vector_store %arg16[%c0_41, %c0_42], %48 {strides = array<i32>} : memref<8x784xf32, #tpu.memory_space<vmem>>, vector<8x784xf32>,
    return
  }
  func.func @transform_0(%arg0: i32) -> (i32, i32) {
    %c0_i32 = arith.constant 0 : i32
    %c0_i32_0 = arith.constant 0 : i32
    return %arg0, %c0_i32 : i32, i32
  }
  func.func @transform_1(%arg0: i32) -> (i32, i32) {
    %c0_i32 = arith.constant 0 : i32
    %c0_i32_0 = arith.constant 0 : i32
    %c0_i32_1 = arith.constant 0 : i32
    return %c0_i32, %c0_i32_0 : i32, i32
  }
  func.func @transform_2(%arg0: i32) -> (i32, i32) {
    %c0_i32 = arith.constant 0 : i32
    %c0_i32_0 = arith.constant 0 : i32
    %c0_i32_1 = arith.constant 0 : i32
    return %c0_i32, %c0_i32_0 : i32, i32
  }
  func.func @transform_3(%arg0: i32) -> (i32, i32) {
    %c0_i32 = arith.constant 0 : i32
    %c0_i32_0 = arith.constant 0 : i32
    %c0_i32_1 = arith.constant 0 : i32
    return %c0_i32, %c0_i32_0 : i32, i32
  }
  func.func @transform_4(%arg0: i32) -> (i32, i32) {
    %c0_i32 = arith.constant 0 : i32
    %c0_i32_0 = arith.constant 0 : i32
    %c0_i32_1 = arith.constant 0 : i32
    return %c0_i32, %c0_i32_0 : i32, i32
  }
  func.func @transform_5(%arg0: i32) -> (i32, i32) {
    %c0_i32 = arith.constant 0 : i32
    %c0_i32_0 = arith.constant 0 : i32
    %c0_i32_1 = arith.constant 0 : i32
    return %c0_i32, %c0_i32_0 : i32, i32
  }
  func.func @transform_6(%arg0: i32) -> (i32, i32) {
    %c0_i32 = arith.constant 0 : i32
    %c0_i32_0 = arith.constant 0 : i32
    %c0_i32_1 = arith.constant 0 : i32
    return %c0_i32, %c0_i32_0 : i32, i32
  }
  func.func @transform_7(%arg0: i32) -> (i32, i32) {
    %c0_i32 = arith.constant 0 : i32
    %c0_i32_0 = arith.constant 0 : i32
    %c0_i32_1 = arith.constant 0 : i32
    return %c0_i32, %c0_i32_0 : i32, i32
  }
  func.func @transform_8(%arg0: i32) -> (i32, i32) {
    %c0_i32 = arith.constant 0 : i32
    %c0_i32_0 = arith.constant 0 : i32
    %c0_i32_1 = arith.constant 0 : i32
    return %c0_i32, %c0_i32_0 : i32, i32
  }
  func.func @transform_9(%arg0: i32) -> (i32, i32) {
    %c0_i32 = arith.constant 0 : i32
    %c0_i32_0 = arith.constant 0 : i32
    %c0_i32_1 = arith.constant 0 : i32
    return %c0_i32, %c0_i32_0 : i32, i32
  }
  func.func @transform_10(%arg0: i32) -> (i32, i32) {
    %c0_i32 = arith.constant 0 : i32
    %c0_i32_0 = arith.constant 0 : i32
    %c0_i32_1 = arith.constant 0 : i32
    return %c0_i32, %c0_i32_0 : i32, i32
  }
  func.func @transform_11(%arg0: i32) -> (i32, i32) {
    %c0_i32 = arith.constant 0 : i32
    %c0_i32_0 = arith.constant 0 : i32
    %c0_i32_1 = arith.constant 0 : i32
    return %c0_i32, %c0_i32_0 : i32, i32
  }
  func.func @transform_12(%arg0: i32) -> (i32, i32) {
    %c0_i32 = arith.constant 0 : i32
    %c0_i32_0 = arith.constant 0 : i32
    %c0_i32_1 = arith.constant 0 : i32
    return %c0_i32, %c0_i32_0 : i32, i32
  }
  func.func @transform_13(%arg0: i32) -> (i32, i32) {
    %c0_i32 = arith.constant 0 : i32
    %c0_i32_0 = arith.constant 0 : i32
    %c0_i32_1 = arith.constant 0 : i32
    return %c0_i32, %c0_i32_0 : i32, i32
  }
  func.func @transform_14(%arg0: i32) -> (i32, i32) {
    %c0_i32 = arith.constant 0 : i32
    %c0_i32_0 = arith.constant 0 : i32
    %c0_i32_1 = arith.constant 0 : i32
    return %c0_i32, %c0_i32_0 : i32, i32
  }
  func.func @transform_15(%arg0: i32) -> (i32, i32) {
    %c0_i32 = arith.constant 0 : i32
    %c0_i32_0 = arith.constant 0 : i32
    return %arg0, %c0_i32 : i32, i32
  }
}

</mosaic_0001>

<bundles_post_ra>
// kernel: _autoencoder_forward.1
= control target key start
LH: loop header
LB: loop body
LE: loop exit
PB: predicated region body
PF: predicated region fallthrough
CT: control target
= control target key end

     0   :  { %s2376_s0 = inlined_call_operand.vmem [shape: f32[12,784], index: 0, kind: input, shape index: {}]   ;;  %s2377_s1 = inlined_call_operand.vmem [shape: f32[784,128], index: 1, kind: input, shape index: {}]   ;;  %s2378_s2 = inlined_call_operand.vmem [shape: f32[1,128], index: 2, kind: input, shape index: {}]   ;;  %s2379_s3 = inlined_call_operand.vmem [shape: f32[128,64], index: 3, kind: input, shape index: {}]   ;;  %s2380_s4 = inlined_call_operand.vmem [shape: f32[1,64], index: 4, kind: input, shape index: {}]   ;;  %s2381_s5 = inlined_call_operand.vmem [shape: f32[64,12], index: 5, kind: input, shape index: {}]   ;;  %s2382_s6 = inlined_call_operand.vmem [shape: f32[1,12], index: 6, kind: input, shape index: {}]   ;;  %s2383_s7 = inlined_call_operand.vmem [shape: f32[12,12], index: 7, kind: input, shape index: {}]   ;;  %s2384_s8 = inlined_call_operand.vmem [shape: f32[1,12], index: 8, kind: input, shape index: {}]   ;;  %s2385_s9 = inlined_call_operand.vmem [shape: f32[12,64], index: 9, kind: input, shape index: {}]   ;;  %s2386_s10 = inlined_call_operand.vmem [shape: f32[1,64], index: 10, kind: input, shape index: {}]   ;;  %s2387_s11 = inlined_call_operand.vmem [shape: f32[64,128], index: 11, kind: input, shape index: {}]   ;;  %s2388_s12 = inlined_call_operand.vmem [shape: f32[1,128], index: 12, kind: input, shape index: {}]   ;;  %s2389_s13 = inlined_call_operand.vmem [shape: f32[128,784], index: 13, kind: input, shape index: {}]   ;;  %s2390_s14 = inlined_call_operand.vmem [shape: f32[1,784], index: 14, kind: input, shape index: {}]   ;;  %s2391_s15 = inlined_call_operand.hbm [shape: f32[12,784], index: 15, kind: output, shape index: {}]  }
   0x1   :  { %2398 = sst [smem:[#allocation11_spill]] %s2376_s0 }
   0x2   :  { %20 = vsyncpa [#allocation3], 0 }
   0x3   :  { %22 = vsyncpa [#allocation3 + $0x1], 0  ;;  %s1508_s18 = smov 0   ;;  %s1510_s19 = smov 0  }
   0x4   :  { %s1512_s20 = smov 0   ;;  %s1514_s21 = smov 0  }
   0x5 LB: > { %2399 = sst [smem:[#allocation5_spill]] %s1414_s18  ;;  %s1529_s22 = sadd.s32 4294967295, %s1426_s21   ;;  %s1426_s21 = sphi %s1514_s21, %s2411_s21   ;;  %s1422_s20 = sphi %s1512_s20, %s2413_s20   ;;  %s1418_s19 = sphi %s1510_s19, %s2415_s19   ;;  %s1414_s18 = sphi %s1508_s18, %s2414_s18  }
   0x6   : > { %2400 = sst [smem:[#allocation6_spill]] %s1422_s20  ;;  %s1287_s23 = sadd.s32 4294967294, %s1426_s21  }
   0x7   : > { %2401 = sst [smem:[#allocation7_spill]] %s1426_s21  ;;  %s1533_s24 = sadd.s32 1, %s1426_s21  }
   0x8   : > { %2402 = sst [smem:[#allocation8_spill]] %s1533_s24  ;;  %s355_s25 = sadd.s32 1, %s1422_s20 }
   0x9   : > { %s352_s26 = ssub.s32 %s1426_s21, %s1533_s24  ;;  %p365_p0 = scmp.ne.s32.totalorder %s1422_s20, %s1418_s19 }
   0xa   : > { %p353_p1 = scmp.eq.s32.totalorder %s352_s26, 0  ;;  %p366_p2 = scmp.eq.s32.totalorder %s1529_s22, 1 }
   0xb   : > { %p371_p3 = scmp.ne.s32.totalorder %s1418_s19, %s1414_s18  ;;  %p372_p4 = scmp.eq.s32.totalorder %s1287_s23, 1 }
   0xc   : > { %s1544_s27 = scalar_select %p353_p1, %s1422_s20, %s355_s25  }
   0xd   : > { %p1546_p5 = por %p366_p2, %p365_p0  ;;  %p1550_p6 = por %p372_p4, %p371_p3 }
   0xe   : > { %2403 = sst [smem:[#allocation9_spill]] %s1544_s27  ;;  %p1290_p7 = scmp.ge.s32.totalorder %s1426_s21, 1 }
   0xf   : > { %s2405_s29 = scalar_select %p1550_p6, 1, 0 }
  0x10   : > { %p440_p8 = scmp.lt.s32.totalorder %s1426_s21, 3 }
  0x11   : > { %2406 = sst [smem:[#allocation10_spill]] %s2405_s29 }
  0x12   : > { %p441_p9 = pnand %p1290_p7, %p440_p8 }
  0x13   : > { %p488_p10 = scmp.lt.s32.totalorder (!%p441_p9), %s1529_s22, 1  ;;  %s2407_s0 = sld [smem:[#allocation11_spill]] (!%p441_p9) }
  0x14   : > { %444 = sbr.rel (%p441_p9) target bundleno = 1044 (0x414), region = 80  ;;  %s485_s25 = sand.u32 (!%p441_p9), 1, %s1418_s19  }
  0x15   : > { %s1304_s20 = smul.u32 (!%p441_p9), 56, %s1529_s22  ;;  %s1212_s18 = scalar_lea.sflag (!%p441_p9), [#allocation3], %s485_s25 }
  0x17   : > { %s1223_s24 = scalar_lea.hbm (!%p441_p9), %s2391_s15, %s1304_s20  ;;  %s1384_s20 = scalar_lea.hbm (!%p441_p9), %s2391_s15, 112 }
  0x18   : > { %s1227_s30 = sshll.u32 (!%p441_p9), %s1223_s24, 4  ;;  %s1228_s30 = int_to_ptr.hbm [resolvable:$true] %s1227_s30 }
  0x19   : > { %v515_v0 = vld [vmem:[%s2377_s1 + $0x78] sm:$0xff]  ;;  %v514_v1 = vld [vmem:[%s2377_s1 + $0x70] sm:$0xff]  ;;  %v513_v4 = vld [vmem:[%s2377_s1 + $0x68] sm:$0xff]  ;;  %s1713_s17 = scalar_select %p488_p10, %s1529_s22, 1  ;;  %vm602_vm0 = vcmask 130048   ;;  %vm835_vm1 = vcmask 1043456  }
  0x1a   : > { %v531_v2 = vld [vmem:[%s2377_s1 + $0xf8] sm:$0xff]  ;;  %606 = vmatpush.msra.mxu0 %v515_v0  ;;  %v530_v3 = vld [vmem:[%s2377_s1 + $0xf0] sm:$0xff]  ;;  %v529_v5 = vld [vmem:[%s2377_s1 + $0xe8] sm:$0xff]  ;;  %vm800_vm2 = vcmask 523264   ;;  %vm831_vm3 = vcmask 97280   ;;  %s1378_s16 = sshra.s32 %s1228_s30, 4  ;;  %s1379_s16 = int_to_ptr.hbm [resolvable:$true] %s1378_s16 }
  0x1b   : > { %626 = vmatpush.msra.mxu1 %v531_v2  ;;  %v512_v6 = vld [vmem:[%s2377_s1 + $0x60] sm:$0xff]  ;;  %v511_v8 = vld [vmem:[%s2377_s1 + $0x58] sm:$0xff]  ;;  %v510_v10 = vld [vmem:[%s2377_s1 + $0x50] sm:$0xff]  ;;  %s1303_s29 = smul.u32 56, %s1713_s17  ;;  %p1385_p0 = scmp.lt.s32.totalorder %s1379_s16, %s2391_s15 }
  0x1c   : > { %607 = vmatpush.msra.mxu0 %v514_v1  ;;  %v528_v7 = vld [vmem:[%s2377_s1 + $0xe0] sm:$0xff]  ;;  %v527_v9 = vld [vmem:[%s2377_s1 + $0xd8] sm:$0xff]  ;;  %v526_v12 = vld [vmem:[%s2377_s1 + $0xd0] sm:$0xff] }
  0x1d   : > { %627 = vmatpush.msra.mxu1 %v530_v3  ;;  %v547_v11 = vld [vmem:[%s2377_s1 + $0x178] sm:$0xff]  ;;  %v546_v13 = vld [vmem:[%s2377_s1 + $0x170] sm:$0xff]  ;;  %v545_v15 = vld [vmem:[%s2377_s1 + $0x168] sm:$0xff]  ;;  %s1767_s17 = scalar_lea.vmem %s2407_s0, %s1303_s29  ;;  %s1302_s29 = smul.u32 56, %s485_s25 }
  0x1e   : > { %608 = vmatpush.msra.mxu0 %v513_v4  ;;  %646 = vmatpush.msra.mxu2 %v547_v11  ;;  %v563_v14 = vld [vmem:[%s2377_s1 + $0x1f8] sm:$0xff]  ;;  %v562_v16 = vld [vmem:[%s2377_s1 + $0x1f0] sm:$0xff]  ;;  %v509_v17 = vld [vmem:[%s2377_s1 + $0x48] sm:$0xff] }
  0x1f   : > { %628 = vmatpush.msra.mxu1 %v529_v5  ;;  %v525_v18 = vld [vmem:[%s2377_s1 + $0xc8] sm:$0xff]  ;;  %666 = vmatpush.msra.mxu3 %v563_v14  ;;  %v544_v19 = vld [vmem:[%s2377_s1 + $0x160] sm:$0xff]  ;;  %v543_v23 = vld [vmem:[%s2377_s1 + $0x158] sm:$0xff]  ;;  %s487_s26 = scalar_lea.vmem [#allocation2], %s1302_s29 }
  0x20   : > { %609 = vmatpush.msra.mxu0 %v512_v6  ;;  %647 = vmatpush.msra.mxu2 %v546_v13  ;;  %v561_v20 = vld [vmem:[%s2377_s1 + $0x1e8] sm:$0xff]  ;;  %v508_v21 = vld [vmem:[%s2377_s1 + $0x40] sm:$0xff]  ;;  %v507_v25 = vld [vmem:[%s2377_s1 + $0x38] sm:$0xff]  ;;  %s1225_s22 = sshll.u32 %s487_s26, 4  ;;  %s1226_s22 = int_to_ptr.vmem [resolvable:$true] %s1225_s22 }
  0x21   : > { %629 = vmatpush.msra.mxu1 %v528_v7  ;;  %v524_v22 = vld [vmem:[%s2377_s1 + $0xc0] sm:$0xff]  ;;  %667 = vmatpush.msra.mxu3 %v562_v16  ;;  %v523_v26 = vld [vmem:[%s2377_s1 + $0xb8] sm:$0xff]  ;;  %v542_v27 = vld [vmem:[%s2377_s1 + $0x150] sm:$0xff] }
  0x22   : > { %610 = vmatpush.msra.mxu0 %v511_v8  ;;  %648 = vmatpush.msra.mxu2 %v545_v15  ;;  %v560_v24 = vld [vmem:[%s2377_s1 + $0x1e0] sm:$0xff]  ;;  %v559_v28 = vld [vmem:[%s2377_s1 + $0x1d8] sm:$0xff]  ;;  %v506_v29 = vld [vmem:[%s2377_s1 + $0x30] sm:$0xff] }
  0x23   : > { %630 = vmatpush.msra.mxu1 %v527_v9  ;;  %668 = vmatpush.msra.mxu3 %v561_v20  ;;  %v522_v30 = vld [vmem:[%s2377_s1 + $0xb0] sm:$0xff]  ;;  %v541_v31 = vld [vmem:[%s2377_s1 + $0x148] sm:$0xff]  ;;  %v540_v35 = vld [vmem:[%s2377_s1 + $0x140] sm:$0xff] }
  0x24   : > { %611 = vmatpush.msra.mxu0 %v510_v10  ;;  %649 = vmatpush.msra.mxu2 %v544_v19  ;;  %v558_v32 = vld [vmem:[%s2377_s1 + $0x1d0] sm:$0xff]  ;;  %v505_v33 = vld [vmem:[%s2377_s1 + $0x28] sm:$0xff]  ;;  %v504_v37 = vld [vmem:[%s2377_s1 + $0x20] sm:$0xff] }
  0x25   : > { %631 = vmatpush.msra.mxu1 %v526_v12  ;;  %669 = vmatpush.msra.mxu3 %v560_v24  ;;  %v521_v34 = vld [vmem:[%s2377_s1 + $0xa8] sm:$0xff]  ;;  %v520_v38 = vld [vmem:[%s2377_s1 + $0xa0] sm:$0xff]  ;;  %v539_v39 = vld [vmem:[%s2377_s1 + $0x138] sm:$0xff] }
  0x26   : > { %612 = vmatpush.msra.mxu0 %v509_v17  ;;  %650 = vmatpush.msra.mxu2 %v543_v23  ;;  %v557_v36 = vld [vmem:[%s2377_s1 + $0x1c8] sm:$0xff]  ;;  %v556_v40 = vld [vmem:[%s2377_s1 + $0x1c0] sm:$0xff]  ;;  %v503_v41 = vld [vmem:[%s2377_s1 + $0x18] sm:$0xff] }
  0x27   : > { %632 = vmatpush.msra.mxu1 %v525_v18  ;;  %670 = vmatpush.msra.mxu3 %v559_v28  ;;  %v519_v42 = vld [vmem:[%s2377_s1 + $0x98] sm:$0xff]  ;;  %v538_v43 = vld [vmem:[%s2377_s1 + $0x130] sm:$0xff]  ;;  %v537_v47 = vld [vmem:[%s2377_s1 + $0x128] sm:$0xff] }
  0x28   : > { %613 = vmatpush.msra.mxu0 %v508_v21  ;;  %651 = vmatpush.msra.mxu2 %v542_v27  ;;  %v555_v44 = vld [vmem:[%s2377_s1 + $0x1b8] sm:$0xff]  ;;  %v502_v45 = vld [vmem:[%s2377_s1 + $0x10] sm:$0xff]  ;;  %v501_v49 = vld [vmem:[%s2377_s1 + $0x8] sm:$0xff] }
  0x29   : > { %633 = vmatpush.msra.mxu1 %v524_v22  ;;  %671 = vmatpush.msra.mxu3 %v558_v32  ;;  %v518_v46 = vld [vmem:[%s2377_s1 + $0x90] sm:$0xff]  ;;  %v517_v50 = vld [vmem:[%s2377_s1 + $0x88] sm:$0xff]  ;;  %v536_v51 = vld [vmem:[%s2377_s1 + $0x120] sm:$0xff] }
  0x2a   : > { %614 = vmatpush.msra.mxu0 %v507_v25  ;;  %652 = vmatpush.msra.mxu2 %v541_v31  ;;  %v554_v48 = vld [vmem:[%s2377_s1 + $0x1b0] sm:$0xff]  ;;  %v553_v52 = vld [vmem:[%s2377_s1 + $0x1a8] sm:$0xff]  ;;  %v500_v53 = vld [vmem:[%s2377_s1] sm:$0xff] }
  0x2b   : > { %634 = vmatpush.msra.mxu1 %v523_v26  ;;  %672 = vmatpush.msra.mxu3 %v557_v36  ;;  %v516_v54 = vld [vmem:[%s2377_s1 + $0x80] sm:$0xff]  ;;  %v579_v55 = vld [vmem:[%s2377_s1 + $0x278] sm:$0xff]  ;;  %v578_v59 = vld [vmem:[%s2377_s1 + $0x270] sm:$0xff] }
  0x2c   : > { %615 = vmatpush.msra.mxu0 %v506_v29  ;;  %653 = vmatpush.msra.mxu2 %v540_v35  ;;  %v595_v56 = vld [vmem:[%s2377_s1 + $0x2f8] sm:$0xff]  ;;  %v552_v58 = vld [vmem:[%s2377_s1 + $0x1a0] sm:$0xff]  ;;  %v594_v60 = vld [vmem:[%s2377_s1 + $0x2f0] sm:$0xff] }
  0x2d   : > { %635 = vmatpush.msra.mxu1 %v522_v30  ;;  %673 = vmatpush.msra.mxu3 %v556_v40  ;;  %v535_v57 = vld [vmem:[%s2377_s1 + $0x118] sm:$0xff]  ;;  %v534_v61 = vld [vmem:[%s2377_s1 + $0x110] sm:$0xff]  ;;  %v577_v63 = vld [vmem:[%s2377_s1 + $0x268] sm:$0xff] }
  0x2e   : > { %616 = vmatpush.msra.mxu0 %v505_v33  ;;  %654 = vmatpush.msra.mxu2 %v539_v39  ;;  %v551_v62 = vld [vmem:[%s2377_s1 + $0x198] sm:$0xff]  ;;  %v593_v0 = vld [vmem:[%s2377_s1 + $0x2e8] sm:$0xff]  ;;  %v550_v2 = vld [vmem:[%s2377_s1 + $0x190] sm:$0xff] }
  0x2f   : > { %636 = vmatpush.msra.mxu1 %v521_v34  ;;  %674 = vmatpush.msra.mxu3 %v555_v44  ;;  %v533_v1 = vld [vmem:[%s2377_s1 + $0x108] sm:$0xff]  ;;  %v576_v3 = vld [vmem:[%s2377_s1 + $0x260] sm:$0xff]  ;;  %v575_v4 = vld [vmem:[%s2377_s1 + $0x258] sm:$0xff] }
  0x30   : > { %617 = vmatpush.msra.mxu0 %v504_v37  ;;  %655 = vmatpush.msra.mxu2 %v538_v43  ;;  %v592_v5 = vld [vmem:[%s2377_s1 + $0x2e0] sm:$0xff]  ;;  %v591_v6 = vld [vmem:[%s2377_s1 + $0x2d8] sm:$0xff]  ;;  %v549_v8 = vld [vmem:[%s2377_s1 + $0x188] sm:$0xff] }
  0x31   : > { %637 = vmatpush.msra.mxu1 %v520_v38  ;;  %675 = vmatpush.msra.mxu3 %v554_v48  ;;  %v532_v7 = vld [vmem:[%s2377_s1 + $0x100] sm:$0xff]  ;;  %v574_v9 = vld [vmem:[%s2377_s1 + $0x250] sm:$0xff]  ;;  %v597_v13 = vld [vmem:[%s2377_s1 + $0x308] sm:$0xff] }
  0x32   : > { %618 = vmatpush.msra.mxu0 %v503_v41  ;;  %656 = vmatpush.msra.mxu2 %v537_v47  ;;  %v495_v10 = vld [vmem:[%s1767_s17 + $0x10] sm:$0xff]  ;;  %v548_v11 = vld [vmem:[%s2377_s1 + $0x180] sm:$0xff]  ;;  %v573_v15 = vld [vmem:[%s2377_s1 + $0x248] sm:$0xff] }
  0x33   : > { %638 = vmatpush.msra.mxu1 %v519_v42  ;;  %676 = vmatpush.msra.mxu3 %v553_v52  ;;  %v590_v12 = vld [vmem:[%s2377_s1 + $0x2d0] sm:$0xff]  ;;  %v493_v14 = vld [vmem:[%s1767_s17] sm:$0xff]  ;;  %v589_v16 = vld [vmem:[%s2377_s1 + $0x2c8] sm:$0xff] }
  0x34   : > { %619 = vmatpush.msra.mxu0 %v502_v45  ;;  %657 = vmatpush.msra.mxu2 %v536_v51  ;;  %v496_v17 = vld [vmem:[%s1767_s17 + $0x18] sm:$0xff]  ;;  %v494_v18 = vld [vmem:[%s1767_s17 + $0x8] sm:$0xff]  ;;  %v572_v19 = vld [vmem:[%s2377_s1 + $0x240] sm:$0xff] }
  0x35   : > { %639 = vmatpush.msra.mxu1 %v518_v46  ;;  %677 = vmatpush.msra.mxu3 %v552_v58  ;;  %v588_v20 = vld [vmem:[%s2377_s1 + $0x2c0] sm:$0xff]  ;;  %v762_v22 = vld [vmem:[%s2379_s3 + $0x78] sm:$0xff]  ;;  %v499_v25 = vld [vmem:[%s1767_s17 + $0x30] sm:$0xff] }
  0x36   : > { %620 = vmatpush.msra.mxu0 %v501_v49  ;;  %658 = vmatpush.msra.mxu2 %v535_v57  ;;  %v596_v21 = vld [vmem:[%s2377_s1 + $0x300] sm:$0xff]  ;;  %v571_v23 = vld [vmem:[%s2377_s1 + $0x238] sm:$0xff]  ;;  %v761_v26 = vld [vmem:[%s2379_s3 + $0x70] sm:$0xff] }
  0x37   : > { %640 = vmatpush.msra.mxu1 %v517_v50  ;;  %678 = vmatpush.msra.mxu3 %v551_v62  ;;  %v587_v24 = vld [vmem:[%s2377_s1 + $0x2b8] sm:$0xff]  ;;  %v570_v27 = vld [vmem:[%s2377_s1 + $0x230] sm:$0xff]  ;;  %v760_v29 = vld [vmem:[%s2379_s3 + $0x68] sm:$0xff] }
  0x38   : > { %621 = vmatpush.msra.mxu0 %v500_v53  ;;  %659 = vmatpush.msra.mxu2 %v534_v61  ;;  %v586_v28 = vld [vmem:[%s2377_s1 + $0x2b0] sm:$0xff]  ;;  %v569_v30 = vld [vmem:[%s2377_s1 + $0x228] sm:$0xff]  ;;  %v759_v32 = vld [vmem:[%s2379_s3 + $0x60] sm:$0xff] }
  0x39   : > { %641 = vmatpush.msra.mxu1 %v516_v54  ;;  %679 = vmatpush.msra.mxu3 %v550_v2  ;;  %v585_v31 = vld [vmem:[%s2377_s1 + $0x2a8] sm:$0xff]  ;;  %v568_v33 = vld [vmem:[%s2377_s1 + $0x220] sm:$0xff]  ;;  %v758_v35 = vld [vmem:[%s2379_s3 + $0x58] sm:$0xff] }
  0x3a   : > { %686 = vmatpush.msrb.mxu0 %v579_v55  ;;  %660 = vmatpush.msra.mxu2 %v533_v1  ;;  %v584_v34 = vld [vmem:[%s2377_s1 + $0x2a0] sm:$0xff]  ;;  %v567_v36 = vld [vmem:[%s2377_s1 + $0x218] sm:$0xff]  ;;  %v757_v38 = vld [vmem:[%s2379_s3 + $0x50] sm:$0xff] }
  0x3b   : > { %706 = vmatpush.msrb.mxu1 %v595_v56  ;;  %680 = vmatpush.msra.mxu3 %v549_v8  ;;  %v583_v37 = vld [vmem:[%s2377_s1 + $0x298] sm:$0xff]  ;;  %v566_v39 = vld [vmem:[%s2377_s1 + $0x210] sm:$0xff]  ;;  %v756_v41 = vld [vmem:[%s2379_s3 + $0x48] sm:$0xff] }
  0x3c   : > { %687 = vmatpush.msrb.mxu0 %v578_v59  ;;  %661 = vmatpush.msra.mxu2 %v532_v7  ;;  %v582_v40 = vld [vmem:[%s2377_s1 + $0x290] sm:$0xff]  ;;  %v565_v42 = vld [vmem:[%s2377_s1 + $0x208] sm:$0xff]  ;;  %v564_v44 = vld [vmem:[%s2377_s1 + $0x200] sm:$0xff] }
  0x3d   : > { %707 = vmatpush.msrb.mxu1 %v594_v60  ;;  %662 = vmatmul.f32.vlgmr.msra.gmra.mxu2 %v495_v10  ;;  %v581_v43 = vld [vmem:[%s2377_s1 + $0x288] sm:$0xff]  ;;  %v580_v45 = vld [vmem:[%s2377_s1 + $0x280] sm:$0xff]  ;;  %v754_v49 = vld [vmem:[%s2379_s3 + $0x38] sm:$0xff] }
  0x3e   : > { %688 = vmatpush.msrb.mxu0 %v577_v63  ;;  %681 = vmatpush.msra.mxu3 %v548_v11  ;;  %v497_v46 = vld [vmem:[%s1767_s17 + $0x20] sm:$0xff]  ;;  %v498_v47 = vld [vmem:[%s1767_s17 + $0x28] sm:$0xff]  ;;  %v753_v50 = vld [vmem:[%s2379_s3 + $0x30] sm:$0xff]  ;;  %s1380_s17 = scalar_lea.hbm %s1379_s16, 56 }
  0x3f   : > { %708 = vmatpush.msrb.mxu1 %v593_v0  ;;  %740 = vmatpush.msrb.mxu2 %v597_v13  ;;  %v755_v48 = vld [vmem:[%s2379_s3 + $0x40] sm:$0xff]  ;;  %v752_v51 = vld [vmem:[%s2379_s3 + $0x28] sm:$0xff]  ;;  %v750_v53 = vld [vmem:[%s2379_s3 + $0x18] sm:$0xff]  ;;  %p1381_p11 = scmp.ne.s32.totalorder %s1379_s16, %s1380_s17  ;;  %p1386_p1 = scmp.lt.s32.totalorder %s1384_s20, %s1380_s17 }
  0x40   : > { %689 = vmatpush.msrb.mxu0 %v576_v3  ;;  %682 = vmatmul.f32.vlgmr.msra.gmra.mxu3 %v496_v17  ;;  %v751_v52 = vld [vmem:[%s2379_s3 + $0x20] sm:$0xff]  ;;  %v749_v54 = vld [vmem:[%s2379_s3 + $0x10] sm:$0xff]  ;;  %v748_v55 = vld [vmem:[%s2379_s3 + $0x8] sm:$0xff] }
  0x41   : > { %709 = vmatpush.msrb.mxu1 %v592_v5  ;;  %622 = vmatmul.f32.vlgmr.msra.gmra.mxu0 %v493_v14  ;;  %v747_v56 = vld [vmem:[%s2379_s3] sm:$0xff]  ;;  %v795_v57 = vld [vmem:[%s2381_s5 + $0x38] sm:$0xff]  ;;  %v794_v58 = vld [vmem:[%s2381_s5 + $0x30] sm:$0xff]  ;;  %p1382_p12 = pnand %p1381_p11, %p1546_p5  ;;  %p1387_p2 = por %p1386_p1, %p1385_p0 }
  0x42   : > { %690 = vmatpush.msrb.mxu0 %v575_v4  ;;  %642 = vmatmul.f32.vlgmr.msra.gmra.mxu1 %v494_v18  ;;  %v793_v59 = vld [vmem:[%s2381_s5 + $0x28] sm:$0xff]  ;;  %v1344_v60 = vld [vmem:[%s2378_s2] ss:$0 sm:$0xff]  ;;  %v791_v63 = vld [vmem:[%s2381_s5 + $0x18] sm:$0xff] }
  0x43   : > { %710 = vmatpush.msrb.mxu1 %v591_v6  ;;  %741 = vmatpush.msrb.mxu2 %v596_v21  ;;  %v792_v61 = vld [vmem:[%s2381_s5 + $0x20] sm:$0xff]  ;;  %v790_v14 = vld [vmem:[%s2381_s5 + $0x10] sm:$0xff]  ;;  %v826_v17 = vld [vmem:[%s2383_s7 + $0x8] sm:$0xf]  ;;  %p1383_p13 = pneg %p1382_p12 }
  0x44   : > { %691 = vmatpush.msrb.mxu0 %v574_v9  ;;  %767 = vmatpush.msrb.mxu3 %v762_v22  ;;  %v1345_v18 = vld [vmem:[%s2380_s4] ss:$0 sm:$0xff] }
  0x45   : > { %711 = vmatpush.msrb.mxu1 %v590_v12  ;;  %1292 = vmatmul.msk.f32.vlgmr.msrb.gmra.mxu2 %vm602_vm0, %v499_v25  ;;  %v825_v22 = vld [vmem:[%s2383_s7] sm:$0xff]  ;;  %p1388_p3 = pnand %p1387_p2, %p1383_p13 }
  0x46   : > { %692 = vmatpush.msrb.mxu0 %v573_v15  ;;  %768 = vmatpush.msrb.mxu3 %v761_v26  ;;  %v789_v15 = vld [vmem:[%s2381_s5 + $0x8] sm:$0xff] }
  0x47   : > { %712 = vmatpush.msrb.mxu1 %v589_v16  ;;  %812 = vmatpush.msra.mxu2 %v795_v57  ;;  %v788_v16 = vld [vmem:[%s2381_s5] sm:$0xff]  ;;  %v1000_v57 = vld [vmem:[%s2389_s13 + $0x238] sm:$0xff] }
  0x48   : > { %693 = vmatpush.msrb.mxu0 %v572_v19  ;;  %769 = vmatpush.msrb.mxu3 %v760_v29  ;;  %v900_v29 = vld [vmem:[%s2387_s11 + $0x38] sm:$0xff] }
  0x49   : > { %713 = vmatpush.msrb.mxu1 %v588_v20  ;;  %813 = vmatpush.msra.mxu2 %v794_v58  ;;  %v1001_v58 = vld [vmem:[%s2389_s13 + $0x240] sm:$0xff] }
  0x4a   : > { %694 = vmatpush.msrb.mxu0 %v571_v23  ;;  %770 = vmatpush.msrb.mxu3 %v759_v32  ;;  %v861_v23 = vld [vmem:[%s2385_s9 + $0x8] sm:$0xf]  ;;  %v897_v32 = vld [vmem:[%s2387_s11 + $0x20] sm:$0xff] }
  0x4b   : > { %714 = vmatpush.msrb.mxu1 %v587_v24  ;;  %814 = vmatpush.msra.mxu2 %v793_v59  ;;  %v1346_v24 = vld [vmem:[%s2382_s6] ss:$0 sm:$0xff]  ;;  %v992_v59 = vld [vmem:[%s2389_s13 + $0x1f8] sm:$0xff] }
  0x4c   : > { %695 = vmatpush.msrb.mxu0 %v570_v27  ;;  %771 = vmatpush.msrb.mxu3 %v758_v35 }
  0x4d   : > { %715 = vmatpush.msrb.mxu1 %v586_v28  ;;  %815 = vmatpush.msra.mxu2 %v792_v61  ;;  %v860_v28 = vld [vmem:[%s2385_s9] sm:$0xff]  ;;  %v994_v61 = vld [vmem:[%s2389_s13 + $0x208] sm:$0xff] }
  0x4e   : > { %696 = vmatpush.msrb.mxu0 %v569_v30  ;;  %772 = vmatpush.msrb.mxu3 %v757_v38  ;;  %v899_v30 = vld [vmem:[%s2387_s11 + $0x30] sm:$0xff] }
  0x4f   : > { %716 = vmatpush.msrb.mxu1 %v585_v31  ;;  %816 = vmatpush.msra.mxu2 %v791_v63  ;;  %v898_v31 = vld [vmem:[%s2387_s11 + $0x28] sm:$0xff]  ;;  %v895_v38 = vld [vmem:[%s2387_s11 + $0x10] sm:$0xff] }
  0x50   : > { %697 = vmatpush.msrb.mxu0 %v568_v33  ;;  %773 = vmatpush.msrb.mxu3 %v756_v41  ;;  %v896_v33 = vld [vmem:[%s2387_s11 + $0x18] sm:$0xff]  ;;  %v1034_v41 = vld [vmem:[%s2389_s13 + $0x348] sm:$0xff] }
  0x51   : > { %717 = vmatpush.msrb.mxu1 %v584_v34  ;;  %817 = vmatpush.msra.mxu2 %v790_v14  ;;  %v1347_v34 = vld [vmem:[%s2384_s8] ss:$0 sm:$0xff]  ;;  %v986_v63 = vld [vmem:[%s2389_s13 + $0x1c8] sm:$0xff] }
  0x52   : > { %698 = vmatpush.msrb.mxu0 %v567_v36  ;;  %774 = vmatpush.msrb.mxu3 %v755_v48  ;;  %v1021_v48 = vld [vmem:[%s2389_s13 + $0x2e0] sm:$0xff] }
  0x53   : > { %718 = vmatpush.msrb.mxu1 %v583_v37  ;;  %818 = vmatpush.msra.mxu2 %v789_v15  ;;  %v1009_v14 = vld [vmem:[%s2389_s13 + $0x280] sm:$0xff] }
  0x54   : > { %699 = vmatpush.msrb.mxu0 %v566_v39  ;;  %775 = vmatpush.msrb.mxu3 %v754_v49  ;;  %v894_v39 = vld [vmem:[%s2387_s11 + $0x8] sm:$0xff]  ;;  %v957_v15 = vld [vmem:[%s2389_s13 + $0xe0] sm:$0xff] }
  0x55   : > { %719 = vmatpush.msrb.mxu1 %v582_v40  ;;  %819 = vmatpush.msra.mxu2 %v788_v16  ;;  %v893_v40 = vld [vmem:[%s2387_s11] sm:$0xff]  ;;  %v1022_v49 = vld [vmem:[%s2389_s13 + $0x2e8] sm:$0xff] }
  0x56   : > { %700 = vmatpush.msrb.mxu0 %v565_v42  ;;  %776 = vmatpush.msrb.mxu3 %v753_v50  ;;  %v1035_v42 = vld [vmem:[%s2389_s13 + $0x350] sm:$0xff]  ;;  %v1013_v50 = vld [vmem:[%s2389_s13 + $0x2a0] sm:$0xff]  ;;  %v958_v16 = vld [vmem:[%s2389_s13 + $0xe8] sm:$0xff] }
  0x57   : > { %720 = vmatpush.msrb.mxu1 %v581_v43  ;;  %1294 = vmatpush.msk.msrb.mxu2 %vm835_vm1, %v826_v17  ;;  %v1036_v43 = vld [vmem:[%s2389_s13 + $0x358] sm:$0xff]  ;;  %v959_v17 = vld [vmem:[%s2389_s13 + $0xf0] sm:$0xff] }
  0x58   : > { %701 = vmatpush.msrb.mxu0 %v564_v44  ;;  %777 = vmatpush.msrb.mxu3 %v752_v51  ;;  %v1027_v44 = vld [vmem:[%s2389_s13 + $0x310] sm:$0xff]  ;;  %v1014_v51 = vld [vmem:[%s2389_s13 + $0x2a8] sm:$0xff] }
  0x59   : > { %721 = vmatpush.msrb.mxu1 %v580_v45  ;;  %702 = vmatmul.f32.vlgmr.msrb.gmra.mxu0 %v497_v46  ;;  %v1028_v45 = vld [vmem:[%s2389_s13 + $0x318] sm:$0xff]  ;;  %v1029_v46 = vld [vmem:[%s2389_s13 + $0x320] sm:$0xff] }
  0x5a   : > { %722 = vmatmul.f32.vlgmr.msrb.gmra.mxu1 %v498_v47  ;;  %778 = vmatpush.msrb.mxu3 %v751_v52  ;;  %v1020_v47 = vld [vmem:[%s2389_s13 + $0x2d8] sm:$0xff]  ;;  %v1015_v52 = vld [vmem:[%s2389_s13 + $0x2b0] sm:$0xff] }
  0x5b   : > { %854 = vmatpush.msrb.mxu2 %v825_v22  ;;  %1296 = vmatpush.msk.msra.mxu1 %vm835_vm1, %v861_v23  ;;  %v995_v22 = vld [vmem:[%s2389_s13 + $0x210] sm:$0xff]  ;;  %v1348_v23 = vld [vmem:[%s2386_s10] ss:$0 sm:$0xff] }
  0x5c   : > { %779 = vmatpush.msrb.mxu3 %v750_v53  ;;  %1097 = vmatpush.msra.mxu0 %v1036_v43  ;;  %v1006_v53 = vld [vmem:[%s2389_s13 + $0x268] sm:$0xff]  ;;  %v1032_v43 = vld [vmem:[%s2389_s13 + $0x338] sm:$0xff] }
  0x5d   : > { %887 = vmatpush.msra.mxu1 %v860_v28  ;;  %v936_v28 = vld [vmem:[%s2389_s13 + $0x38] sm:$0xff] }
  0x5e   : > { %780 = vmatpush.msrb.mxu3 %v749_v54  ;;  %1098 = vmatpush.msra.mxu0 %v1029_v46  ;;  %v1007_v54 = vld [vmem:[%s2389_s13 + $0x270] sm:$0xff]  ;;  %v1024_v46 = vld [vmem:[%s2389_s13 + $0x2f8] sm:$0xff] }
  0x5f   : > { %916 = vmatpush.msrb.mxu1 %v900_v29  ;;  %v937_v29 = vld [vmem:[%s2389_s13 + $0x40] sm:$0xff] }
  0x60   : > { %781 = vmatpush.msrb.mxu3 %v748_v55  ;;  %1099 = vmatpush.msra.mxu0 %v1022_v49  ;;  %v1008_v55 = vld [vmem:[%s2389_s13 + $0x278] sm:$0xff] }
  0x61   : > { %917 = vmatpush.msrb.mxu1 %v899_v30  ;;  %v960_v49 = vld [vmem:[%s2389_s13 + $0xf8] sm:$0xff] }
  0x62   : > { %782 = vmatpush.msrb.mxu3 %v747_v56  ;;  %1100 = vmatpush.msra.mxu0 %v1015_v52  ;;  %v999_v56 = vld [vmem:[%s2389_s13 + $0x230] sm:$0xff] }
  0x63   : > { %918 = vmatpush.msrb.mxu1 %v898_v31  ;;  %v938_v31 = vld [vmem:[%s2389_s13 + $0x48] sm:$0xff]  ;;  %v1019_v52 = vld [vmem:[%s2389_s13 + $0x2d0] sm:$0xff] }
  0x64   : > { %1077 = vmatpush.msra.mxu3 %v1035_v42  ;;  %1101 = vmatpush.msra.mxu0 %v1008_v55  ;;  %v1031_v42 = vld [vmem:[%s2389_s13 + $0x330] sm:$0xff] }
  0x65   : > { %919 = vmatpush.msrb.mxu1 %v897_v32  ;;  %v981_v32 = vld [vmem:[%s2389_s13 + $0x1a0] sm:$0xff]  ;;  %v1011_v55 = vld [vmem:[%s2389_s13 + $0x290] sm:$0xff] }
  0x66   : > { %1078 = vmatpush.msra.mxu3 %v1028_v45  ;;  %1102 = vmatpush.msra.mxu0 %v1001_v58  ;;  %v967_v45 = vld [vmem:[%s2389_s13 + $0x130] sm:$0xff]  ;;  %v1004_v58 = vld [vmem:[%s2389_s13 + $0x258] sm:$0xff] }
  0x67   : > { %920 = vmatpush.msrb.mxu1 %v896_v33 }
  0x68   : > { %1079 = vmatpush.msra.mxu3 %v1021_v48  ;;  %1103 = vmatpush.msra.mxu0 %v994_v61  ;;  %v1026_v48 = vld [vmem:[%s2389_s13 + $0x308] sm:$0xff]  ;;  %v997_v61 = vld [vmem:[%s2389_s13 + $0x220] sm:$0xff] }
  0x69   : > { %921 = vmatpush.msrb.mxu1 %v895_v38  ;;  %v1038_v38 = vld [vmem:[%s2389_s13 + $0x368] sm:$0xff] }
  0x6a   : > { %1080 = vmatpush.msra.mxu3 %v1014_v51  ;;  %v1018_v51 = vld [vmem:[%s2389_s13 + $0x2c8] sm:$0xff] }
  0x6b   : > { %922 = vmatpush.msrb.mxu1 %v894_v39  ;;  %v1039_v39 = vld [vmem:[%s2389_s13 + $0x370] sm:$0xff] }
  0x6c   : > { %1081 = vmatpush.msra.mxu3 %v1007_v54  ;;  %v1010_v54 = vld [vmem:[%s2389_s13 + $0x288] sm:$0xff] }
  0x6d   : > { %923 = vmatpush.msrb.mxu1 %v893_v40  ;;  %v1040_v40 = vld [vmem:[%s2389_s13 + $0x378] sm:$0xff] }
  0x6e   : > { %1082 = vmatpush.msra.mxu3 %v1000_v57  ;;  %v1003_v57 = vld [vmem:[%s2389_s13 + $0x250] sm:$0xff] }
  0xbe   : > { %v623_v62 = vpop.f32.mrf.mxu0 }
  0xbf   : > { %v624_v0 = vadd.f32 %v1344_v60, %v623_v62  ;;  %v643_v1 = vpop.f32.mrf.mxu1  ;;  %v993_v60 = vld [vmem:[%s2389_s13 + $0x200] sm:$0xff] }
  0xc0   : > { %v663_v3 = vpop.f32.mrf.mxu2  ;;  %v985_v62 = vld [vmem:[%s2389_s13 + $0x1c0] sm:$0xff]  ;;  %1083 = vmatpush.msra.mxu3 %v993_v60  ;;  %v996_v60 = vld [vmem:[%s2389_s13 + $0x218] sm:$0xff] }
  0xc1   : > { %v644_v2 = vadd.f32 %v643_v1, %v624_v0  ;;  %v1037_v0 = vld [vmem:[%s2389_s13 + $0x360] sm:$0xff]  ;;  %v987_v1 = vld [vmem:[%s2389_s13 + $0x1d0] sm:$0xff] }
  0xc2   : > { %1084 = vmatpush.msra.mxu3 %v986_v63  ;;  %1104 = vmatpush.msra.mxu0 %v987_v1  ;;  %v989_v63 = vld [vmem:[%s2389_s13 + $0x1e0] sm:$0xff]  ;;  %v991_v1 = vld [vmem:[%s2389_s13 + $0x1f0] sm:$0xff] }
  0xc3   : > { %v664_v4 = vadd.f32 %v663_v3, %v644_v2  ;;  %v683_v5 = vpop.f32.mrf.mxu3  ;;  %v1030_v2 = vld [vmem:[%s2389_s13 + $0x328] sm:$0xff] }
  0xc4   : > { %v978_v3 = vld [vmem:[%s2389_s13 + $0x188] sm:$0xff] }
  0xc5   : > { %v684_v6 = vadd.f32 %v683_v5, %v664_v4  ;;  %v979_v4 = vld [vmem:[%s2389_s13 + $0x190] sm:$0xff]  ;;  %v980_v5 = vld [vmem:[%s2389_s13 + $0x198] sm:$0xff] }
  0xc6   : > { %1085 = vmatpush.msra.mxu3 %v979_v4  ;;  %1105 = vmatpush.msra.mxu0 %v980_v5  ;;  %v984_v4 = vld [vmem:[%s2389_s13 + $0x1b8] sm:$0xff]  ;;  %v946_v5 = vld [vmem:[%s2389_s13 + $0x88] sm:$0xff] }
  0xc8   : > { %v743_v10 = vpop.f32.mrf.mxu2 }
  0xd6   : > { %v703_v7 = vpop.f32.mrf.mxu0 }
  0xd7   : > { %v723_v8 = vpop.f32.mrf.mxu1  ;;  %v704_v9 = vadd.f32 %v703_v7, %v684_v6  ;;  %v1023_v6 = vld [vmem:[%s2389_s13 + $0x2f0] sm:$0xff] }
  0xd8   : > { %v971_v7 = vld [vmem:[%s2389_s13 + $0x150] sm:$0xff] }
  0xd9   : > { %v724_v11 = vadd.f32 %v723_v8, %v704_v9  ;;  %v972_v8 = vld [vmem:[%s2389_s13 + $0x158] sm:$0xff]  ;;  %v973_v9 = vld [vmem:[%s2389_s13 + $0x160] sm:$0xff] }
  0xda   : > { %1086 = vmatpush.msra.mxu3 %v972_v8  ;;  %1106 = vmatpush.msra.mxu0 %v973_v9  ;;  %v977_v8 = vld [vmem:[%s2389_s13 + $0x180] sm:$0xff]  ;;  %v939_v9 = vld [vmem:[%s2389_s13 + $0x50] sm:$0xff] }
  0xdb   : > { %v744_v12 = vadd.f32 %v743_v10, %v724_v11  ;;  %v1016_v10 = vld [vmem:[%s2389_s13 + $0x2b8] sm:$0xff] }
  0xdc   : > { %v964_v11 = vld [vmem:[%s2389_s13 + $0x118] sm:$0xff] }
  0xdd   : > { %v746_v13 = vmax.f32 %v744_v12, 0.0  ;;  %v965_v12 = vld [vmem:[%s2389_s13 + $0x120] sm:$0xff] }
  0xde   : > { %1087 = vmatpush.msra.mxu3 %v965_v12  ;;  %v970_v12 = vld [vmem:[%s2389_s13 + $0x148] sm:$0xff] }
  0xdf   : > { %783 = vmatmul.f32.vlgmr.msrb.gmra.mxu3 %v746_v13  ;;  %v966_v13 = vld [vmem:[%s2389_s13 + $0x128] sm:$0xff] }
  0xe0   : > { %1107 = vmatpush.msra.mxu0 %v966_v13  ;;  %1088 = vmatpush.msra.mxu3 %v958_v16  ;;  %v932_v13 = vld [vmem:[%s2389_s13 + $0x18] sm:$0xff]  ;;  %v963_v16 = vld [vmem:[%s2389_s13 + $0x110] sm:$0xff] }
  0xe2   : > { %1108 = vmatpush.msra.mxu0 %v959_v17  ;;  %v954_v17 = vld [vmem:[%s2389_s13 + $0xc8] sm:$0xff] }
 0x162   : > { %v784_v19 = vpop.f32.mrf.mxu3 }
 0x163   : > { %v785_v20 = vadd.f32 %v1345_v18, %v784_v19  ;;  %v1002_v18 = vld [vmem:[%s2389_s13 + $0x248] sm:$0xff] }
 0x164   : > { %v950_v19 = vld [vmem:[%s2389_s13 + $0xa8] sm:$0xff] }
 0x165   : > { %v787_v21 = vmax.f32 %v785_v20, 0.0  ;;  %v951_v20 = vld [vmem:[%s2389_s13 + $0xb0] sm:$0xff] }
 0x166   : > { %1089 = vmatpush.msra.mxu3 %v951_v20  ;;  %v947_v20 = vld [vmem:[%s2389_s13 + $0x90] sm:$0xff] }
 0x167   : > { %1293 = vmatmul.msk.f32.vlgmr.msra.gmra.mxu2 %vm800_vm2, %v787_v21  ;;  %v952_v21 = vld [vmem:[%s2389_s13 + $0xb8] sm:$0xff] }
 0x168   : > { %1057 = vmatpush.msra.mxu2 %v1034_v41  ;;  %1109 = vmatpush.msra.mxu0 %v952_v21  ;;  %v974_v41 = vld [vmem:[%s2389_s13 + $0x168] sm:$0xff]  ;;  %v948_v21 = vld [vmem:[%s2389_s13 + $0x98] sm:$0xff] }
 0x16a   : > { %1058 = vmatpush.msra.mxu2 %v1027_v44  ;;  %v1033_v44 = vld [vmem:[%s2389_s13 + $0x340] sm:$0xff] }
 0x16c   : > { %1059 = vmatpush.msra.mxu2 %v1020_v47  ;;  %v1025_v47 = vld [vmem:[%s2389_s13 + $0x300] sm:$0xff] }
 0x16e   : > { %1060 = vmatpush.msra.mxu2 %v1013_v50  ;;  %v1017_v50 = vld [vmem:[%s2389_s13 + $0x2c0] sm:$0xff] }
 0x170   : > { %1061 = vmatpush.msra.mxu2 %v1006_v53  ;;  %v953_v53 = vld [vmem:[%s2389_s13 + $0xc0] sm:$0xff] }
 0x172   : > { %1062 = vmatpush.msra.mxu2 %v999_v56  ;;  %v1012_v56 = vld [vmem:[%s2389_s13 + $0x298] sm:$0xff] }
 0x174   : > { %1063 = vmatpush.msra.mxu2 %v992_v59  ;;  %v1005_v59 = vld [vmem:[%s2389_s13 + $0x260] sm:$0xff] }
 0x176   : > { %1064 = vmatpush.msra.mxu2 %v985_v62  ;;  %v998_v62 = vld [vmem:[%s2389_s13 + $0x228] sm:$0xff] }
 0x178   : > { %1065 = vmatpush.msra.mxu2 %v978_v3  ;;  %v983_v3 = vld [vmem:[%s2389_s13 + $0x1b0] sm:$0xff] }
 0x17a   : > { %1066 = vmatpush.msra.mxu2 %v971_v7  ;;  %v976_v7 = vld [vmem:[%s2389_s13 + $0x178] sm:$0xff] }
 0x17c   : > { %1067 = vmatpush.msra.mxu2 %v964_v11  ;;  %v969_v11 = vld [vmem:[%s2389_s13 + $0x140] sm:$0xff] }
 0x17e   : > { %1068 = vmatpush.msra.mxu2 %v957_v15  ;;  %v962_v15 = vld [vmem:[%s2389_s13 + $0x108] sm:$0xff] }
 0x180   : > { %1069 = vmatpush.msra.mxu2 %v950_v19  ;;  %v956_v19 = vld [vmem:[%s2389_s13 + $0xd8] sm:$0xff] }
 0x1ea   : > { %v821_v25 = vpop.f32.mrf.mxu2 }
 0x1eb   : > { %v822_v26 = vadd.f32 %v1346_v24, %v821_v25  ;;  %v943_v24 = vld [vmem:[%s2389_s13 + $0x70] sm:$0xff]  ;;  %v944_v25 = vld [vmem:[%s2389_s13 + $0x78] sm:$0xff] }
 0x1ec   : > { %1070 = vmatpush.msra.mxu2 %v943_v24  ;;  %1090 = vmatpush.msra.mxu3 %v944_v25  ;;  %v941_v24 = vld [vmem:[%s2389_s13 + $0x60] sm:$0xff]  ;;  %v942_v25 = vld [vmem:[%s2389_s13 + $0x68] sm:$0xff] }
 0x1ed   : > { %v824_v27 = vmax.f32 %v822_v26, 0.0  ;;  %v945_v26 = vld [vmem:[%s2389_s13 + $0x80] sm:$0xff] }
 0x1ee   : > { %1110 = vmatpush.msra.mxu0 %v945_v26  ;;  %1071 = vmatpush.msra.mxu2 %v936_v28  ;;  %v933_v26 = vld [vmem:[%s2389_s13 + $0x20] sm:$0xff]  ;;  %v935_v28 = vld [vmem:[%s2389_s13 + $0x30] sm:$0xff] }
 0x1ef   : > { %1295 = vmatmul.msk.f32.vlgmr.msrb.gmra.mxu2 %vm831_vm3, %v824_v27  ;;  %v988_v27 = vld [vmem:[%s2389_s13 + $0x1d8] sm:$0xff]  ;;  %1091 = vmatpush.msra.mxu3 %v937_v29  ;;  %v1349_v29 = vld [vmem:[%s2388_s12] ss:$0 sm:$0xff] }
 0x1f0   : > { %1111 = vmatpush.msra.mxu0 %v938_v31 }
 0x272   : > { %v856_v35 = vpop.f32.mrf.mxu2 }
 0x273   : > { %v857_v36 = vadd.f32 %v1347_v34, %v856_v35  ;;  %v929_v34 = vld [vmem:[%s2389_s13] sm:$0xff]  ;;  %v930_v35 = vld [vmem:[%s2389_s13 + $0x8] sm:$0xff] }
 0x274   : > { %1072 = vmatpush.msra.mxu2 %v929_v34  ;;  %1092 = vmatpush.msra.mxu3 %v930_v35 }
 0x275   : > { %v859_v37 = vmax.f32 %v857_v36, 0.0  ;;  %v931_v36 = vld [vmem:[%s2389_s13 + $0x10] sm:$0xff] }
 0x276   : > { %1112 = vmatpush.msra.mxu0 %v931_v36  ;;  %1137 = vmatpush.msrb.mxu2 %v1038_v38 }
 0x277   : > { %1297 = vmatmul.msk.f32.vlgmr.msra.gmra.mxu1 %vm831_vm3, %v859_v37  ;;  %1157 = vmatpush.msrb.mxu3 %v1039_v39 }
 0x278   : > { %1117 = vmatpush.msra.mxu1 %v1037_v0  ;;  %1177 = vmatpush.msrb.mxu0 %v1040_v40  ;;  %v990_v0 = vld [vmem:[%s2389_s13 + $0x1e8] sm:$0xff] }
 0x279   : > { %1138 = vmatpush.msrb.mxu2 %v1031_v42  ;;  %1158 = vmatpush.msrb.mxu3 %v1032_v43 }
 0x27a   : > { %1118 = vmatpush.msra.mxu1 %v1030_v2  ;;  %1178 = vmatpush.msrb.mxu0 %v1033_v44  ;;  %v982_v2 = vld [vmem:[%s2389_s13 + $0x1a8] sm:$0xff] }
 0x27b   : > { %1139 = vmatpush.msrb.mxu2 %v1024_v46  ;;  %1159 = vmatpush.msrb.mxu3 %v1025_v47 }
 0x27c   : > { %1119 = vmatpush.msra.mxu1 %v1023_v6  ;;  %1179 = vmatpush.msrb.mxu0 %v1026_v48  ;;  %v975_v6 = vld [vmem:[%s2389_s13 + $0x170] sm:$0xff] }
 0x27d   : > { %1140 = vmatpush.msrb.mxu2 %v1017_v50  ;;  %1160 = vmatpush.msrb.mxu3 %v1018_v51 }
 0x27e   : > { %1120 = vmatpush.msra.mxu1 %v1016_v10  ;;  %1180 = vmatpush.msrb.mxu0 %v1019_v52  ;;  %v968_v10 = vld [vmem:[%s2389_s13 + $0x138] sm:$0xff] }
 0x27f   : > { %1141 = vmatpush.msrb.mxu2 %v1010_v54  ;;  %1161 = vmatpush.msrb.mxu3 %v1011_v55 }
 0x280   : > { %1121 = vmatpush.msra.mxu1 %v1009_v14  ;;  %1181 = vmatpush.msrb.mxu0 %v1012_v56  ;;  %v961_v14 = vld [vmem:[%s2389_s13 + $0x100] sm:$0xff] }
 0x281   : > { %1142 = vmatpush.msrb.mxu2 %v1003_v57  ;;  %1162 = vmatpush.msrb.mxu3 %v1004_v58 }
 0x282   : > { %1122 = vmatpush.msra.mxu1 %v1002_v18  ;;  %1182 = vmatpush.msrb.mxu0 %v1005_v59  ;;  %v955_v18 = vld [vmem:[%s2389_s13 + $0xd0] sm:$0xff] }
 0x283   : > { %1143 = vmatpush.msrb.mxu2 %v996_v60  ;;  %1163 = vmatpush.msrb.mxu3 %v997_v61 }
 0x284   : > { %1123 = vmatpush.msra.mxu1 %v995_v22  ;;  %1183 = vmatpush.msrb.mxu0 %v998_v62  ;;  %v949_v22 = vld [vmem:[%s2389_s13 + $0xa0] sm:$0xff] }
 0x285   : > { %1144 = vmatpush.msrb.mxu2 %v989_v63  ;;  %1164 = vmatpush.msrb.mxu3 %v990_v0 }
 0x286   : > { %1124 = vmatpush.msra.mxu1 %v988_v27  ;;  %1184 = vmatpush.msrb.mxu0 %v991_v1  ;;  %v934_v27 = vld [vmem:[%s2389_s13 + $0x28] sm:$0xff] }
 0x287   : > { %1145 = vmatpush.msrb.mxu2 %v982_v2  ;;  %1165 = vmatpush.msrb.mxu3 %v983_v3 }
 0x288   : > { %1125 = vmatpush.msra.mxu1 %v981_v32  ;;  %1185 = vmatpush.msrb.mxu0 %v984_v4 }
 0x289   : > { %1146 = vmatpush.msrb.mxu2 %v975_v6  ;;  %1166 = vmatpush.msrb.mxu3 %v976_v7 }
 0x28a   : > { %1126 = vmatpush.msra.mxu1 %v974_v41  ;;  %1186 = vmatpush.msrb.mxu0 %v977_v8 }
 0x28b   : > { %1147 = vmatpush.msrb.mxu2 %v968_v10  ;;  %1167 = vmatpush.msrb.mxu3 %v969_v11 }
 0x28c   : > { %1127 = vmatpush.msra.mxu1 %v967_v45  ;;  %1187 = vmatpush.msrb.mxu0 %v970_v12 }
 0x28d   : > { %1148 = vmatpush.msrb.mxu2 %v961_v14  ;;  %1168 = vmatpush.msrb.mxu3 %v962_v15 }
 0x28e   : > { %1128 = vmatpush.msra.mxu1 %v960_v49  ;;  %1188 = vmatpush.msrb.mxu0 %v963_v16 }
 0x28f   : > { %1149 = vmatpush.msrb.mxu2 %v954_v17  ;;  %1169 = vmatpush.msrb.mxu3 %v955_v18 }
 0x290   : > { %1129 = vmatpush.msra.mxu1 %v953_v53  ;;  %1189 = vmatpush.msrb.mxu0 %v956_v19 }
 0x291   : > { %1150 = vmatpush.msrb.mxu2 %v947_v20  ;;  %1170 = vmatpush.msrb.mxu3 %v948_v21 }
 0x292   : > { %1130 = vmatpush.msra.mxu1 %v946_v5  ;;  %1190 = vmatpush.msrb.mxu0 %v949_v22 }
 0x293   : > { %1171 = vmatpush.msrb.mxu3 %v941_v24 }
 0x294   : > { %1131 = vmatpush.msra.mxu1 %v939_v9  ;;  %1191 = vmatpush.msrb.mxu0 %v942_v25 }
 0x295   : > { %1172 = vmatpush.msrb.mxu3 %v934_v27 }
 0x296   : > { %1132 = vmatpush.msra.mxu1 %v932_v13  ;;  %1192 = vmatpush.msrb.mxu0 %v935_v28 }
 0x2f4   : > { %v889_v30 = vpop.f32.mrf.mxu1 }
 0x2f5   : > { %v890_v33 = vadd.f32 %v1348_v23, %v889_v30  ;;  %v940_v23 = vld [vmem:[%s2389_s13 + $0x58] sm:$0xff] }
 0x2f6   : > { %1151 = vmatpush.msrb.mxu2 %v940_v23 }
 0x2f7   : > { %v892_v37 = vmax.f32 %v890_v33, 0.0  ;;  %v1041_v33 = vld [vmem:[%s2390_s14] sm:$0x7f] }
 0x2f8   : > { %1152 = vmatpush.msrb.mxu2 %v933_v26  ;;  %v1045_v34 = vperm.slane %v1041_v33, 2  ;;  %v1046_v35 = vperm.slane %v1041_v33, 3  ;;  %v1043_v40 = vperm.slane %v1041_v33, 0  ;;  %v1044_v41 = vperm.slane %v1041_v33, 1 }
 0x2f9   : > { %1298 = vmatmul.msk.f32.vlgmr.msrb.gmra.mxu1 %vm800_vm2, %v892_v37  ;;  %v1049_v44 = vperm.slane %v1041_v33, 6  ;;  %v1047_v51 = vperm.slane %v1041_v33, 4  ;;  %v1048_v52 = vperm.slane %v1041_v33, 5 }
 0x376   : > { %v925_v30 = vpop.f32.mrf.mxu1 }
 0x377   : > { %v926_v31 = vadd.f32 %v1349_v29, %v925_v30 }
 0x379   : > { %v928_v32 = vmax.f32 %v926_v31, 0.0 }
 0x37b   : > { %1073 = vmatmul.f32.vlgmr.msra.gmra.mxu2 %v928_v32  ;;  %1093 = vmatmul.f32.vlgmr.msra.gmra.mxu3 %v928_v32 }
 0x37c   : > { %1113 = vmatmul.f32.vlgmr.msra.gmra.mxu0 %v928_v32  ;;  %1133 = vmatmul.f32.vlgmr.msra.gmra.mxu1 %v928_v32 }
 0x383   : > { %1153 = vmatmul.f32.vlgmr.msrb.gmra.mxu2 %v928_v32  ;;  %1173 = vmatmul.f32.vlgmr.msrb.gmra.mxu3 %v928_v32 }
 0x384   : > { %1193 = vmatmul.f32.vlgmr.msrb.gmra.mxu0 %v928_v32 }
 0x3f9   : > { %v1114_v36 = vpop.f32.mrf.mxu0  ;;  %v1134_v37 = vpop.f32.mrf.mxu1 }
 0x3fa   : > { %v1115_v38 = vadd.f32 %v1114_v36, %v1045_v34  ;;  %v1135_v39 = vadd.f32 %v1134_v37, %v1046_v35 }
 0x3fc   : > { %1350 = vtanh.f32 %v1115_v38 }
 0x3fd   : > { %1352 = vtanh.f32 %v1135_v39 }
 0x3fe   : > { %v1074_v42 = vpop.f32.mrf.mxu2  ;;  %v1094_v43 = vpop.f32.mrf.mxu3 }
 0x3ff   : > { %v1075_v45 = vadd.f32 %v1074_v42, %v1043_v40  ;;  %v1095_v46 = vadd.f32 %v1094_v43, %v1044_v41 }
 0x401   : > { %1354 = vtanh.f32 %v1075_v45  ;;  %v1194_v47 = vpop.f32.mrf.mxu0 }
 0x402   : > { %v1351_v48 = vpop.eup %1350  ;;  %1356 = vtanh.f32 %v1095_v46  ;;  %v1195_v49 = vadd.f32 %v1194_v47, %v1049_v44 }
 0x403   : > { %v1353_v50 = vpop.eup %1352  ;;  %1206 = vst [vmem:[%s487_s26 + $0x10] sm:$0xff] %v1351_v48 }
 0x404   : > { %1207 = vst [vmem:[%s487_s26 + $0x18] sm:$0xff] %v1353_v50  ;;  %1358 = vtanh.f32 %v1195_v49 }
 0x406   : > { %v1154_v53 = vpop.f32.mrf.mxu2  ;;  %v1174_v54 = vpop.f32.mrf.mxu3 }
 0x407   : > { %v1355_v55 = vpop.eup %1354  ;;  %v1155_v56 = vadd.f32 %v1154_v53, %v1047_v51  ;;  %v1175_v57 = vadd.f32 %v1174_v54, %v1048_v52 }
 0x408   : > { %v1357_v58 = vpop.eup %1356  ;;  %1204 = vst [vmem:[%s487_s26] sm:$0xff] %v1355_v55 }
 0x409   : > { %1205 = vst [vmem:[%s487_s26 + $0x8] sm:$0xff] %v1357_v58  ;;  %1360 = vtanh.f32 %v1155_v56 }
 0x40a   : > { %v1359_v59 = vpop.eup %1358  ;;  %1362 = vtanh.f32 %v1175_v57 }
 0x40b   : > { %1210 = vst.msk [vmem:[%s487_s26 + $0x30] sm:$0xff] %vm602_vm0, %v1359_v59 }
 0x40f   : > { %v1361_v60 = vpop.eup %1360 }
 0x410   : > { %v1363_v61 = vpop.eup %1362  ;;  %1208 = vst [vmem:[%s487_s26 + $0x20] sm:$0xff] %v1361_v60 }
 0x411   : > { %1209 = vst [vmem:[%s487_s26 + $0x28] sm:$0xff] %v1363_v61 }
 0x412   : > { %1391 = shalt.err (!%p1388_p3)
}
 0x413   : > { %1305 = dma.vmem_to_hbm [thread:$0]  (%p1546_p5), %s1226_s22, 896, %s1228_s30, %s1212_s18  }
 0x414 PF: > { %s2408_s25 = sld [smem:[#allocation7_spill]] }
 0x415   : > { %s2409_s26 = sld [smem:[#allocation5_spill]] }
 0x41a   : > { %p1311_p4 = scmp.ge.s32.totalorder %s2408_s25, 2 }
 0x41b   : > { %s1239_s0 = sand.u32 1, %s2409_s26  }
 0x41c   : > { %p1308_p7 = pnand %p1311_p4, %p1550_p6  ;;  %s1240_s23 = scalar_lea.sflag [#allocation3], %s1239_s0 }
 0x41e   : > { %p1309_p8 = pneg %p1308_p7 }
 0x420   : > { %1409 = dma.done.wait (%p1309_p8), %s1240_s23, 896  }
 0x421   : > { %1411 = vsyncadd (%p1309_p8), %s1240_s23, 4294966400  ;;  %s2411_s21 = sld [smem:[#allocation8_spill]]  ;;  %s2414_s18 = smov %s1418_s19 }
 0x422   : > { %s2412_s16 = sld [smem:[#allocation6_spill]] }
 0x423   : > { %s2413_s20 = sld [smem:[#allocation9_spill]] }
 0x427   : > { %p25_p9 = scmp.ge.s32.totalorder %s2411_s21, 4  }
 0x428   : > { %s2415_s19 = smov %s2412_s16 }
 0x429   :  { %27 = sbr.rel (!%p25_p9) target bundleno = 5 (0x5), region = 115 }
 0x42e   :  { %1246 = vsyncpa [#allocation3], 1 }
 0x42f   :  { %1248 = vsyncpa [#allocation3 + $0x1], 1 }

</bundles_post_ra>
